<compile_context>
chip_gen: v6e
topology: v6e:2x2x1
jax: 0.10.0
libtpu: 0.0.40
codegen_flags: <defaults>
</compile_context>

<pallas_src>
import jax
import jax.numpy as jnp
from jax import lax
from jax.experimental import pallas as pl
from jax.experimental.pallas import tpu as pltpu


def _round_up(x, m):
    return (x + m - 1) // m * m


# ---------------------------------------------------------------------------
# Pallas kernel: one fused GEMM  (packed im2col patches) @ W_block + b_block
# ---------------------------------------------------------------------------
def _stemseq_kernel(p_ref, w_ref, b_ref, o_ref):
    # p_ref: (TM, Kc)  bf16 packed im2col patch rows for this tile
    # w_ref: (Kc, N)   bf16 fused (conv o proj), block-diagonal weight (grid-invariant)
    # b_ref: (1, N)    f32 fused bias (grid-invariant)
    # o_ref: (TM, N)   output tile, N is a multiple of 128 -> lane-dense stores
    acc = jnp.dot(p_ref[...], w_ref[...],
                  preferred_element_type=jnp.float32)        # (TM, N) f32 accum
    o_ref[...] = (acc + b_ref[...]).astype(o_ref.dtype)


def _pick_tm(m_rows, tm_target):
    """Largest multiple of 16 that divides m_rows and is <= tm_target (or None)."""
    if m_rows % 16 != 0:
        return None
    hi = min(tm_target, m_rows) // 16 * 16
    for cand in range(hi, 15, -16):
        if m_rows % cand == 0:
            return cand
    return None


def stemseq_pallas(x_nchw, conv_w, conv_b, proj_w, proj_b, *,
                   stride=2, pad=1, tm=2048,
                   compute_dtype=jnp.bfloat16, out_dtype=jnp.bfloat16):
    """Fused `proj(stem(x).permute(0,2,3,1).reshape(B, Fp*Tp, C))`.

    x_nchw: (B, Cin, H, W) f32 (PyTorch NCHW)
    conv_w: (Cout, Cin, K, K)   conv_b: (Cout,)   (PyTorch Conv2d layout)
    proj_w: (D, Cout)           proj_b: (D,)      (PyTorch Linear layout)
    Returns (B, Fp*Tp, D) in `out_dtype` (default bf16; pass jnp.float32 for
    bit-width parity with the PyTorch module).
    """
    B, Cin, H, W = x_nchw.shape
    Cout, _, K, _ = conv_w.shape
    D = proj_w.shape[0]
    Ho = (H + 2 * pad - K) // stride + 1
    Wo = (W + 2 * pad - K) // stride + 1
    L = Ho * Wo
    K2Cin = K * K * Cin
    M = B * L                                   # flattened (batch * sequence) rows

    # ---- fuse the two linear maps (f32 precompute) -----------------------
    # W1[(kh*K+kw)*Cin + ci, co] = conv_w[co, ci, kh, kw]  (matches tap order below)
    w1 = jnp.transpose(conv_w, (2, 3, 1, 0)).reshape(K2Cin, Cout).astype(jnp.float32)
    w2 = jnp.transpose(proj_w).astype(jnp.float32)                  # (Cout, D)
    w_fused = jnp.dot(w1, w2)                                       # (K2Cin, D)
    b_fused = jnp.dot(conv_b.astype(jnp.float32), w2) + proj_b      # (D,)

    # ---- lane-dense output strategy ---------------------------------------
    if D % 128 == 0:
        r, N, pad_d = 1, D, 0                      # already lane-dense
    elif (128 % D == 0) and (M % (128 // D) == 0):
        # Row packing: r logical rows per 128-lane output row via a
        # block-diagonal weight -> no zero-padded output bytes, no post-slice.
        r, N, pad_d = 128 // D, 128, 0
    else:
        # Fallback: pad D up to a multiple of 128, slice back afterwards.
        r, N, pad_d = 1, _round_up(D, 128), _round_up(D, 128) - D

    Kc = r * K2Cin
    if r > 1:
        w_blk = jnp.zeros((Kc, N), dtype=jnp.float32)
        for j in range(r):
            w_blk = w_blk.at[j * K2Cin:(j + 1) * K2Cin,
                             j * D:(j + 1) * D].set(w_fused)
        b_blk = jnp.tile(b_fused, (r,))
    else:
        w_blk = jnp.pad(w_fused, ((0, 0), (0, pad_d))) if pad_d else w_fused
        b_blk = jnp.pad(b_fused, (0, pad_d)) if pad_d else b_fused
    w_blk = w_blk.astype(compute_dtype)
    b_blk = b_blk.reshape(1, N).astype(jnp.float32)

    # ---- im2col (bf16 from the start: halves the prologue's HBM traffic) --
    x_nhwc = jnp.transpose(x_nchw, (0, 2, 3, 1)).astype(compute_dtype)
    x_padded = jnp.pad(x_nhwc, ((0, 0), (pad, pad), (pad, pad), (0, 0)))
    taps = []
    for kh in range(K):
        for kw in range(K):
            taps.append(
                x_padded[:, kh:kh + stride * Ho:stride,
                            kw:kw + stride * Wo:stride, :])          # (B, Ho, Wo, Cin)
    patches = jnp.stack(taps, axis=3).reshape(M, K2Cin)              # (B*L, K*K*Cin)
    # TODO(synk): form the K*K taps in-kernel (strided pl.ds on a (K, Wpad, Cin)
    # slab per grid step) to avoid materializing this patches array in HBM.
    patches = patches.reshape(M // r, Kc)                            # row-packed

    # ---- row tiling: 16-aligned TM, no row padding in the common case -----
    M_rows = M // r
    # v7x guard: keep >= ~8 grid steps so both TensorCores stay fed.
    tm_cap = max(16, (M_rows // 8) // 16 * 16)
    tm_target = max(16, min(tm, tm_cap))
    TM = _pick_tm(M_rows, tm_target)
    if TM is None:
        # Awkward M: pad rows, slice the (bias-only) garbage rows off after.
        TM = min(_round_up(tm_target, 16), _round_up(M_rows, 16))
        Mp_rows = _round_up(M_rows, TM)
        patches = jnp.pad(patches, ((0, Mp_rows - M_rows), (0, 0)))
    else:
        Mp_rows = M_rows
    grid = (Mp_rows // TM,)

    grid_spec = pltpu.PrefetchScalarGridSpec(
        num_scalar_prefetch=0,
        grid=grid,
        in_specs=[
            # activation rows: new block every step (pipelined / double-buffered)
            pl.BlockSpec((TM, Kc), lambda i: (i, 0)),
            # fused weight & bias: grid-invariant -> DMA'd once, stay resident
            pl.BlockSpec((Kc, N), lambda i: (0, 0)),
            pl.BlockSpec((1, N), lambda i: (0, 0)),
        ],
        out_specs=pl.BlockSpec((TM, N), lambda i: (i, 0)),
    )

    out = pl.pallas_call(
        _stemseq_kernel,
        out_shape=jax.ShapeDtypeStruct((Mp_rows, N), out_dtype),
        grid_spec=grid_spec,
        compiler_params=pltpu.CompilerParams(
            # Row tiles are independent -> megacore-shardable on v7x.
            dimension_semantics=("parallel",),
            # Safe on every generation (v5e scoped default is 16 MiB, v7x
            # physical VMEM is 64 MiB); actual use here is a few MiB at most.
            vmem_limit_bytes=32 * 1024 * 1024,
        ),
    )(patches, w_blk, b_blk)

    if Mp_rows != M_rows:
        out = out[:M_rows]
    if pad_d:
        out = out[:, :D]
    # (M/r, r*D) -> (B, L, D) is a contiguous (free) reshape.
    return out.reshape(B, L, D)


# ---------------------------------------------------------------------------
# Pure-JAX reference (mirrors the PyTorch module exactly, f32 throughout)
# ---------------------------------------------------------------------------
def stemseq_ref(x_nchw, conv_w, conv_b, proj_w, proj_b, *, stride=2, pad=1):
    z = lax.conv_general_dilated(
        x_nchw, conv_w,
        window_strides=(stride, stride),
        padding=((pad, pad), (pad, pad)),
        dimension_numbers=("NCHW", "OIHW", "NCHW"))
    z = z + conv_b.reshape(1, -1, 1, 1)
    B, C, Fp, Tp = z.shape
    z = jnp.transpose(z, (0, 2, 3, 1)).reshape(B, Fp * Tp, C)
    return z @ proj_w.T + proj_b


if __name__ == "__main__":
    # Small deterministic example consistent with the forward pass:
    # stem = Conv2d(4, 32, 3, stride=2, padding=1), proj = Linear(32, 64).
    B, Cin, H, W = 2, 4, 16, 16
    Cout, K, stride, pad = 32, 3, 2, 1
    D = 64

    key = jax.random.PRNGKey(0)
    kx, kw1, kb1, kw2, kb2 = jax.random.split(key, 5)
    x = jax.random.normal(kx, (B, Cin, H, W), dtype=jnp.float32)
    conv_w = jax.random.normal(kw1, (Cout, Cin, K, K), dtype=jnp.float32) * 0.1
    conv_b = jax.random.normal(kb1, (Cout,), dtype=jnp.float32) * 0.1
    proj_w = jax.random.normal(kw2, (D, Cout), dtype=jnp.float32) * 0.1
    proj_b = jax.random.normal(kb2, (D,), dtype=jnp.float32) * 0.1

    out = stemseq_pallas(x, conv_w, conv_b, proj_w, proj_b,
                         stride=stride, pad=pad)
    out = jax.block_until_ready(out)

    ref = stemseq_ref(x, conv_w, conv_b, proj_w, proj_b, stride=stride, pad=pad)
    assert out.shape == (B, (H // stride) * (W // stride), D), out.shape
    # bf16 MXU operands + bf16 output + algebraic fusion -> compare at a
    # bf16-appropriate tolerance against the f32 two-stage reference.
    max_err = float(jnp.max(jnp.abs(out.astype(jnp.float32) - ref)))
    assert max_err < 3e-2, max_err

    print("KERNEL_OK")
</pallas_src>

<mosaic_0001>
module attributes {stable_mosaic.version = 11 : i64} {
  func.func @_stemseq_kernel(%arg0: i32, %arg1: memref<16x72xbf16, #tpu.memory_space<vmem>>, %arg2: memref<72x128xbf16, #tpu.memory_space<vmem>>, %arg3: memref<1x128xf32, #tpu.memory_space<vmem>>, %arg4: memref<16x128xbf16, #tpu.memory_space<vmem>>) attributes {dimension_semantics = [#tpu.dimension_semantics<parallel>], iteration_bounds = array<i64: 4>, scalar_prefetch = 0 : i64, scratch_operands = 0 : i64, tpu.core_type = #tpu.core_type<tc>, window_params = [{transform_indices = @transform_0, window_bounds = array<i64: 16, 72>}, {pipeline_mode = #tpu.pipeline_mode<synchronous>, transform_indices = @transform_1, window_bounds = array<i64: 72, 128>}, {pipeline_mode = #tpu.pipeline_mode<synchronous>, transform_indices = @transform_2, window_bounds = array<i64: 1, 128>}, {transform_indices = @transform_3, window_bounds = array<i64: 16, 128>}]} {
    %c0 = arith.constant 0 : index
    %c0_0 = arith.constant 0 : index
    %0 = vector.load %arg1[%c0, %c0_0] : memref<16x72xbf16, #tpu.memory_space<vmem>>, vector<16x72xbf16>
    %c0_1 = arith.constant 0 : index
    %c0_2 = arith.constant 0 : index
    %1 = vector.load %arg2[%c0_1, %c0_2] : memref<72x128xbf16, #tpu.memory_space<vmem>>, vector<72x128xbf16>
    %cst = arith.constant dense<0.000000e+00> : vector<16x128xf32>
    %2 = tpu.matmul %0, %1, %cst {dimension_numbers = #tpu.dot_dimension_numbers<[1], [0], [0], [1], [0, 0, 1, 1], [], []>} : vector<16x72xbf16>, vector<72x128xbf16>, vector<16x128xf32> -> vector<16x128xf32>
    %c0_3 = arith.constant 0 : index
    %c0_4 = arith.constant 0 : index
    %3 = vector.load %arg3[%c0_3, %c0_4] : memref<1x128xf32, #tpu.memory_space<vmem>>, vector<1x128xf32>
    %4 = vector.broadcast %3 : vector<1x128xf32> to vector<16x128xf32>
    %5 = arith.addf %2, %4 : vector<16x128xf32>
    %6 = arith.truncf %5 : vector<16x128xf32> to vector<16x128xbf16>
    %c0_5 = arith.constant 0 : index
    %c0_6 = arith.constant 0 : index
    %7 = vector.load %arg4[%c0_5, %c0_6] : memref<16x128xbf16, #tpu.memory_space<vmem>>, vector<16x128xbf16>
    tpu.vector_store %arg4[%c0_5, %c0_6], %6 {strides = array<i32>} : memref<16x128xbf16, #tpu.memory_space<vmem>>, vector<16x128xbf16>,
    return
  }
  func.func @transform_0(%arg0: i32) -> (i32, i32) {
    %c0_i32 = arith.constant 0 : i32
    %c0_i32_0 = arith.constant 0 : i32
    return %arg0, %c0_i32 : i32, i32
  }
  func.func @transform_1(%arg0: i32) -> (i32, i32) {
    %c0_i32 = arith.constant 0 : i32
    %c0_i32_0 = arith.constant 0 : i32
    %c0_i32_1 = arith.constant 0 : i32
    return %c0_i32, %c0_i32_0 : i32, i32
  }
  func.func @transform_2(%arg0: i32) -> (i32, i32) {
    %c0_i32 = arith.constant 0 : i32
    %c0_i32_0 = arith.constant 0 : i32
    %c0_i32_1 = arith.constant 0 : i32
    return %c0_i32, %c0_i32_0 : i32, i32
  }
  func.func @transform_3(%arg0: i32) -> (i32, i32) {
    %c0_i32 = arith.constant 0 : i32
    %c0_i32_0 = arith.constant 0 : i32
    return %arg0, %c0_i32 : i32, i32
  }
}

</mosaic_0001>

<bundles_post_ra>
// kernel: tpu_custom_call.1
= control target key start
LH: loop header
LB: loop body
LE: loop exit
PB: predicated region body
PF: predicated region fallthrough
CT: control target
= control target key end

     0   :  { %8 = vsyncpa [#allocation3], 0  ;;  %s878_s0 = inlined_call_operand.hbm [shape: bf16[64,72], index: 0, kind: input, shape index: {}]   ;;  %s879_s1 = inlined_call_operand.hbm [shape: bf16[72,128], index: 1, kind: input, shape index: {}]   ;;  %s880_s2 = inlined_call_operand.vmem [shape: f32[1,128], index: 2, kind: input, shape index: {}]   ;;  %s881_s3 = inlined_call_operand.hbm [shape: bf16[64,128], index: 3, kind: output, shape index: {}]  }
   0x1   :  { %10 = vsyncpa [#allocation3 + $0x1], 0 }
   0x2   :  { %11 = vsyncpa [#allocation6], 0 }
   0x3   :  { %12 = vsyncpa [#allocation4], 0 }
   0x4   :  { %14 = vsyncpa [#allocation4 + $0x1], 0  ;;  %s690_s12 = smov 0   ;;  %s692_s13 = smov 0  }
   0x5   :  { %s694_s14 = smov 0   ;;  %s696_s15 = smov 0  }
   0x6 LB: > { %s711_s16 = sadd.s32 4294967295, %s659_s15   ;;  %s413_s17 = sadd.s32 4294967294, %s659_s15   ;;  %s659_s15 = sphi %s696_s15, %s902_s15   ;;  %s655_s14 = sphi %s694_s14, %s901_s14   ;;  %s651_s13 = sphi %s692_s13, %s900_s13   ;;  %s647_s12 = sphi %s690_s12, %s899_s12  }
   0x7   : > { %p40_p0 = scmp.ne.s32.totalorder %s651_s13, %s647_s12  ;;  %p882_p1 = scmp.eq.s32.totalorder %s711_s16, 0 }
   0x8   : > { %p112_p3 = scmp.eq.s32.totalorder %s413_s17, 3  ;;  %p414_p5 = scmp.ge.s32.totalorder %s659_s15, 1 }
   0x9   : > { %p720_p4 = por %p882_p1, %p40_p0  ;;  %p119_p7 = scmp.lt.s32.totalorder %s659_s15, 5 }
   0xa   : > { %p725_p6 = por %p112_p3, %p40_p0  ;;  %s661_s21 = smov [#allocation5]  }
   0xb   : > { %s886_s18 = scalar_select %p720_p4, 1, 0 }
   0xc   : > { %s887_s19 = scalar_select %p725_p6, 1, 0 }
   0xd   : > { %p730_p8 = pnand %p414_p5, %p119_p7  ;;  %s131_s22 = sshll.u32 %s661_s21, 4  ;;  %s132_s22 = int_to_ptr.vmem [resolvable:$true] %s131_s22 }
   0xe   : > { %s743_s24 = sadd.s32 1, %s659_s15   ;;  %s27_s25 = sadd.s32 1, %s655_s14 }
   0xf   : > { %s888_s20 = scalar_select %p730_p8, 1, 0 }
  0x10   : > { %p476_p9 = pneg %p730_p8  ;;  %s24_s26 = ssub.s32 %s659_s15, %s743_s24 }
  0x11   : > { %s548_s27 = scalar_lea.vmem %s132_s22, 576  ;;  %p556_p3 = scmp.lt.s32.totalorder %s132_s22, %s132_s22 }
  0x12   : > { %p738_p10 = pnand %p476_p9, %p882_p1  ;;  %p549_p12 = scmp.ne.s32.totalorder %s132_s22, %s548_s27 }
  0x13   : > { %p557_p5 = scmp.lt.s32.totalorder %s548_s27, %s548_s27 }
  0x14   : > { %p539_p11 = pneg %p738_p10 }
  0x15   : > { %p558_p7 = por %p557_p5, %p556_p3 }
  0x16   : > { %p551_p13 = pnand %p549_p12, %p539_p11 }
  0x18   : > { %p552_p0 = pneg %p551_p13 }
  0x1a   : > { %p559_p2 = pnand %p558_p7, %p552_p0 }
  0x1c   : > { %562 = shalt.err (!%p559_p2)
}
  0x1d   : > { %s662_s28 = smov 64   ;;  %s663_s29 = smov 4  }
  0x1e   : > { %479 = dma.hbm_to_vmem [thread:$0]  (!%p738_p10), %s879_s1, 576, %s132_s22, [#allocation6], %s662_s28, %s662_s28, %s663_s29  }
  0x1f   : > { %p25_p2 = scmp.eq.s32.totalorder %s24_s26, 0  ;;  %p34_p9 = scmp.ne.s32.totalorder %s655_s14, %s651_s13 }
  0x20   : > { %p35_p11 = scmp.eq.s32.totalorder %s659_s15, 0  ;;  %p489_p12 = scmp.lt.s32.totalorder %s659_s15, 4 }
  0x21   : > { %s763_s5 = scalar_select %p25_p2, %s655_s14, %s27_s25  }
  0x22   : > { %p36_p13 = por %p35_p11, %p34_p9  ;;  %p890_p0 = scmp.eq.s32.totalorder %s711_s16, 3 }
  0x23   : > { %s148_s7 = sand.u32 1, %s655_s14   ;;  %s439_s8 = sshll.u32 %s659_s15, 7 }
  0x24   : > { %p767_p3 = por %p890_p0, %p34_p9  ;;  %s417_s9 = sshll.u32 %s148_s7, 3 }
  0x25   : > { %s776_s17 = scalar_lea.hbm %s878_s0, %s439_s8  ;;  %s152_s21 = scalar_lea.vmem [#allocation2], %s417_s9 }
  0x26   : > { %s891_s6 = scalar_select %p767_p3, 1, 0 }
  0x27   : > { %s159_s22 = sshll.u32 %s152_s21, 4  ;;  %p778_p10 = pnand %p489_p12, %p36_p13  ;;  %s782_s22 = int_to_ptr.vmem [resolvable:$true] %s159_s22 }
  0x28   : > { %s784_s25 = scalar_lea.sflag [#allocation3], %s148_s7  ;;  %s563_s26 = scalar_lea.hbm %s776_s17, 128 }
  0x29   : > { %p564_p5 = scmp.ne.s32.totalorder %s776_s17, %s563_s26  ;;  %p565_p7 = pneg %p778_p10 }
  0x2a   : > { %s568_s4 = scalar_lea.hbm %s878_s0, 512  ;;  %p569_p11 = scmp.lt.s32.totalorder %s776_s17, %s878_s0 }
  0x2b   : > { %p566_p2 = pnand %p565_p7, %p564_p5  ;;  %p570_p12 = scmp.lt.s32.totalorder %s568_s4, %s563_s26 }
  0x2d   : > { %p567_p9 = pneg %p566_p2  ;;  %p571_p13 = por %p570_p12, %p569_p11 }
  0x2f   : > { %p572_p0 = pnand %p571_p13, %p567_p9 }
  0x31   : > { %575 = shalt.err (!%p572_p0)
}
  0x32   : > { %s576_s7 = scalar_lea.vmem %s782_s22, 128  ;;  %s664_s10 = smov [#allocation2]  }
  0x33   : > { %p577_p1 = scmp.ne.s32.totalorder %s782_s22, %s576_s7  ;;  %s581_s11 = sshll.u32 %s664_s10, 4  ;;  %s582_s11 = int_to_ptr.vmem [resolvable:$false] %s581_s11 }
  0x34   : > { %s583_s21 = scalar_lea.vmem %s582_s11, 256  ;;  %p584_p2 = scmp.lt.s32.totalorder %s782_s22, %s582_s11 }
  0x35   : > { %p579_p6 = pnand %p577_p1, %p565_p7  ;;  %p585_p3 = scmp.lt.s32.totalorder %s583_s21, %s576_s7 }
  0x37   : > { %p580_p5 = pneg %p579_p6  ;;  %p586_p4 = por %p585_p3, %p584_p2 }
  0x39   : > { %p587_p8 = pnand %p586_p4, %p580_p5 }
  0x3b   : > { %590 = shalt.err (!%p587_p8)
}
  0x3c   : > { %483 = dma.hbm_to_vmem [thread:$0]  (!%p778_p10), %s776_s17, 128, %s782_s22, %s784_s25, %s662_s28, %s662_s28, %s663_s29  }
  0x3d   : > { %p893_p1 = scmp.ne.s32.totalorder %s888_s20, 0 }
  0x3e   : > { %s811_s26 = sand.u32 (!%p893_p1), 1, %s651_s13   ;;  %p894_p4 = scmp.ne.s32.totalorder (!%p893_p1), %s886_s18, 0 }
  0x3f   : > { %171 = sbr.rel (%p893_p1) target bundleno = 308 (0x134), region = 32  ;;  %s421_s27 = sshll.u32 (!%p893_p1), %s811_s26, 3 }
  0x40   : > { %s174_s30 = scalar_lea.sflag (!%p893_p1), [#allocation3], %s811_s26  ;;  %s177_s23 = scalar_lea.vmem (!%p893_p1), [#allocation2], %s421_s27 }
  0x44   : > { %634 = dma.done.wait (%p894_p4), %s174_s30, 128  }
  0x45   : > { %636 = vsyncadd (%p894_p4), %s174_s30, 4294967168  ;;  %p895_p6 = scmp.eq.s32.totalorder %s711_s16, 0 }
  0x47   : > { %638 = dma.done.wait (%p895_p6), [#allocation6], 576   ;;  %p896_p8 = pmov %p895_p6 }
  0x48   : > { %v665_v0 = vmov 0.0   ;;  %vm666_vm0 = vmmov 0   ;;  %vm261_vm1 = vcmask 1043456   ;;  %v531_v1 = vld [vmem:[#allocation5 + $0x20] ss:$0 sps:$4 sm:$0xff]   ;;  %v532_v3 = vld [vmem:[#allocation5 + $0x18] sm:$0xff]  }
  0x49   : > { %640 = vsyncadd (%p896_p8), [#allocation6], 4294966720  ;;  %454 = vmatprep.subr.bf16.mxu0 %v665_v0  ;;  %464 = vmatprep.mubr.msk.bf16.mxu0 %vm666_vm0, %v665_v0  ;;  %v263_v2 = vsel %vm261_vm1, %v531_v1, 0  ;;  %v533_v4 = vld [vmem:[#allocation5 + $0x10] sm:$0xff]   ;;  %v534_v5 = vld [vmem:[#allocation5 + $0x8] sm:$0xff]   ;;  %vm257_vm2 = vcmask 588800  }
  0x4a   : > { %455 = vmatpush3.bf16.msra.mxu0 %v263_v2  ;;  %v535_v6 = vld [vmem:[#allocation5] sm:$0xff]   ;;  %v536_v7 = vld [vmem:[%s177_s23] sm:$0xff]   ;;  %s203_s28 = scalar_lea.vmem [#allocation7], %s421_s27  ;;  %s442_s17 = sshll.u32 %s711_s16, 7 }
  0x4b   : > { %456 = vmatprep.subr.bf16.mxu0 %v665_v0  ;;  %v424_v9 = vld [vmem:[%s880_s2] ss:$0 sm:$0xff]  ;;  %s330_s29 = sshll.u32 %s203_s28, 4  ;;  %s836_s4 = scalar_lea.hbm %s881_s3, %s442_s17  ;;  %s831_s29 = int_to_ptr.vmem [resolvable:$true] %s330_s29 }
  0x4c   : > { %s317_s8 = scalar_lea.sflag [#allocation4], %s811_s26  ;;  %s591_s9 = scalar_lea.vmem %s831_s29, 128 }
  0x4d   : > { %p592_p3 = scmp.ne.s32.totalorder %s831_s29, %s591_s9  ;;  %p897_p10 = scmp.ne.s32.totalorder %s891_s6, 0 }
  0x4e   : > { %457 = vmatpush3.bf16.msra.mxu0 %v532_v3  ;;  %s667_s16 = smov [#allocation7]  }
  0x4f   : > { %458 = vmatprep.subr.bf16.mxu0 %v665_v0  ;;  %p593_p7 = pnand %p592_p3, %p897_p10  ;;  %s595_s7 = sshll.u32 %s667_s16, 4  ;;  %s596_s7 = int_to_ptr.vmem [resolvable:$false] %s595_s7 }
  0x50   : > { %s597_s10 = scalar_lea.vmem %s596_s7, 256  ;;  %p598_p11 = scmp.lt.s32.totalorder %s831_s29, %s596_s7 }
  0x51   : > { %p594_p9 = pneg %p593_p7  ;;  %p599_p12 = scmp.lt.s32.totalorder %s597_s10, %s591_s9 }
  0x52   : > { %459 = vmatpush3.bf16.msra.mxu0 %v533_v4 }
  0x53   : > { %460 = vmatprep.subr.bf16.mxu0 %v665_v0  ;;  %p600_p13 = por %p599_p12, %p598_p11 }
  0x55   : > { %p601_p0 = pnand %p600_p13, %p594_p9 }
  0x56   : > { %461 = vmatpush3.bf16.msra.mxu0 %v534_v5 }
  0x57   : > { %462 = vmatprep.subr.bf16.mxu0 %v665_v0 }
  0x5a   : > { %463 = vmatpush3.bf16.msra.mxu0 %v535_v6 }
  0x5d   : > { %465 = vmatmul.mubr.msk.bf16.vlgmr.msra.gmra.mxu0 %vm257_vm2, %v536_v7 }
 0x11d   : > { %v299_v8 = vpop.f32.mrf.mxu0 }
 0x11e   : > { %v300_v12 = vadd.f32 %v424_v9, %v299_v8 }
 0x11f   : > { %v466_v10 = vpop.f32.mrf.mxu0 }
 0x121   : > { %v302_v11 = vpop.f32.mrf.mxu0 }
 0x122   : > { %v303_v13 = vadd.f32 %v424_v9, %v302_v11 }
 0x123   : > { %v467_v14 = vpop.f32.mrf.mxu0 }
 0x124   : > { %v446_v15 = vpack.c.bf16 %v303_v13, %v300_v12 }
 0x126   : > { %447 = vst [vmem:[%s203_s28] sm:$0xff] %v446_v15  }
 0x127   : > { %604 = shalt.err (!%p601_p0)
}
 0x128   : > { %s605_s11 = scalar_lea.hbm %s836_s4, 128  ;;  %s609_s30 = scalar_lea.hbm %s881_s3, 512 }
 0x129   : > { %p606_p5 = scmp.ne.s32.totalorder %s836_s4, %s605_s11  ;;  %p610_p4 = scmp.lt.s32.totalorder %s836_s4, %s881_s3 }
 0x12a   : > { %p611_p6 = scmp.lt.s32.totalorder %s609_s30, %s605_s11 }
 0x12b   : > { %p607_p2 = pnand %p606_p5, %p897_p10 }
 0x12c   : > { %p612_p8 = por %p611_p6, %p610_p4 }
 0x12d   : > { %p608_p1 = pneg %p607_p2 }
 0x12f   : > { %p613_p3 = pnand %p612_p8, %p608_p1 }
 0x131   : > { %616 = shalt.err (!%p613_p3)
}
 0x132   : > { %s668_s20 = smov 64   ;;  %s669_s28 = smov 4  }
 0x133   : > { %474 = dma.vmem_to_hbm [thread:$0]  (%p897_p10), %s831_s29, 128, %s836_s4, %s317_s8, %s668_s20, %s668_s20, %s669_s28  }
 0x134 PF: > { %p491_p7 = scmp.ge.s32.totalorder %s659_s15, 2  ;;  %s345_s17 = sand.u32 1, %s647_s12  }
 0x135   : > { %p898_p9 = scmp.ne.s32.totalorder %s887_s19, 0  ;;  %s346_s22 = scalar_lea.sflag [#allocation4], %s345_s17 }
 0x137   : > { %p485_p11 = pnand %p491_p7, %p898_p9 }
 0x139   : > { %p486_p12 = pneg %p485_p11 }
 0x13b   : > { %642 = dma.done.wait (%p486_p12), %s346_s22, 128  }
 0x13c   : > { %644 = vsyncadd (%p486_p12), %s346_s22, 4294967168  ;;  %p17_p13 = scmp.ge.s32.totalorder %s743_s24, 6   ;;  %s899_s12 = smov %s651_s13 }
 0x13d   : > { %s900_s13 = smov %s655_s14  ;;  %s901_s14 = smov %s763_s5 }
 0x13e   : > { %s902_s15 = smov %s743_s24  ;;  %19 = sbr.rel (!%p17_p13) target bundleno = 6 (0x6), region = 81 }
 0x143   :  { %351 = vsyncpa [#allocation3], 1 }
 0x144   :  { %353 = vsyncpa [#allocation3 + $0x1], 1 }
 0x145   :  { %354 = vsyncpa [#allocation6], 1 }
 0x146   :  { %355 = vsyncpa [#allocation4], 1 }
 0x147   :  { %357 = vsyncpa [#allocation4 + $0x1], 1 }

</bundles_post_ra>
